<compile_context>
chip_gen: v6e
topology: v6e:2x2x1
jax: 0.10.0
libtpu: 0.0.40
codegen_flags: <defaults>
</compile_context>

<pallas_src>
import functools

import jax
import jax.numpy as jnp
from jax.experimental import pallas as pl
from jax.experimental.pallas import tpu as pltpu


def _triplet_kernel(a_ref, p_ref, n_ref, out_ref, *, margin, total_b, tile_b):
    i = pl.program_id(0)

    a = a_ref[...]
    p = p_ref[...]
    n = n_ref[...]

    # dp - dn fused: sum_D (n - p) * (2a - p - n); kept 2-D (tile_b, 1).
    diff = jnp.sum((n - p) * (2.0 * a - p - n), axis=1, keepdims=True)
    losses = jnp.maximum(diff + jnp.float32(margin), jnp.float32(0.0))

    # Mask rows that are batch padding (last-tile masking).
    row = i * tile_b + jax.lax.broadcasted_iota(jnp.int32, (tile_b, 1), 0)
    losses = jnp.where(row < total_b, losses, jnp.float32(0.0))

    # One cross-sublane reduce per tile -> this tile's partial sum.
    out_ref[0, 0] = jnp.sum(losses)


def _vmem_capacity_bytes():
    """Physical VMEM per TensorCore; falls back to the smallest (v7x: 64 MiB)."""
    try:
        cap = int(pltpu.get_tpu_info().vmem_capacity_bytes)
        if cap > 0:
            return cap
    except Exception:
        pass
    return 64 * 1024 * 1024


def _choose_tile_b(B, D, vmem_capacity):
    # 3 f32 inputs, double-buffered by the pipeline: 24 * tile_b * D bytes.
    budget = vmem_capacity // 4          # ample headroom below the scoped limit
    bytes_per_row = 3 * 2 * D * 4
    tile_b = (budget // bytes_per_row // 8) * 8
    tile_b = max(8, min(1024, tile_b))   # >= 1 vreg of sublanes; ~1k rows is plenty
    padded_b = ((B + 7) // 8) * 8
    return min(tile_b, padded_b)         # don't over-pad tiny batches


def triplet_loss(anchor, positive, negative, *, margin=0.2, size_average=True):
    """Pallas TPU implementation of TripletLoss.forward."""
    assert anchor.shape == positive.shape == negative.shape
    assert anchor.ndim == 2
    B, D = anchor.shape

    vmem_capacity = _vmem_capacity_bytes()
    tile_b = _choose_tile_b(B, D, vmem_capacity)
    # TODO(synk): for D so large that even an 8-row block exceeds the VMEM
    # budget, add an inner "arbitrary" D grid axis with per-row partial
    # accumulators (relu applied only after the full-D reduction).

    num_tiles = -(-B // tile_b)
    padded_b = num_tiles * tile_b
    if padded_b != B:
        pad = ((0, padded_b - B), (0, 0))
        anchor = jnp.pad(anchor, pad)
        positive = jnp.pad(positive, pad)
        negative = jnp.pad(negative, pad)

    kernel = functools.partial(
        _triplet_kernel, margin=float(margin), total_b=B, tile_b=tile_b)

    in_spec = pl.BlockSpec((tile_b, D), lambda i: (i, 0))
    out_spec = pl.BlockSpec((1, 1), lambda i: (i, 0), memory_space=pltpu.SMEM)

    partials = pl.pallas_call(
        kernel,
        out_shape=jax.ShapeDtypeStruct((num_tiles, 1), jnp.float32),
        grid_spec=pltpu.PrefetchScalarGridSpec(
            num_scalar_prefetch=0,
            grid=(num_tiles,),
            in_specs=[in_spec, in_spec, in_spec],
            out_specs=out_spec,
        ),
        compiler_params=pltpu.CompilerParams(
            # Independent tiles -> fully parallel; v7x shards across its 2 TCs.
            dimension_semantics=("parallel",),
            vmem_limit_bytes=int(vmem_capacity // 2),
        ),
        cost_estimate=pl.CostEstimate(
            flops=6 * padded_b * D,
            transcendentals=0,
            bytes_accessed=3 * padded_b * D * 4 + num_tiles * 4,
        ),
    )(anchor, positive, negative)

    total = jnp.sum(partials)
    if size_average:
        return total / jnp.float32(B)
    return total


def _reference(anchor, positive, negative, margin=0.2, size_average=True):
    dp = jnp.sum((anchor - positive) ** 2, axis=1)
    dn = jnp.sum((anchor - negative) ** 2, axis=1)
    losses = jnp.maximum(dp - dn + margin, 0.0)
    return losses.mean() if size_average else losses.sum()


if __name__ == "__main__":
    B, D = 16, 128  # small embedding batch; D multiple of 128 for lane tiling
    key = jax.random.PRNGKey(0)
    ka, kp, kn = jax.random.split(key, 3)
    anchor = jax.random.normal(ka, (B, D), dtype=jnp.float32)
    positive = jax.random.normal(kp, (B, D), dtype=jnp.float32)
    negative = jax.random.normal(kn, (B, D), dtype=jnp.float32)

    loss = triplet_loss(anchor, positive, negative, margin=0.2,
                        size_average=True)
    loss = jax.block_until_ready(loss)

    ref = _reference(anchor, positive, negative, margin=0.2,
                     size_average=True)
    assert jnp.allclose(loss, ref, rtol=1e-4, atol=1e-4), (loss, ref)

    print("KERNEL_OK")
</pallas_src>

<mosaic_0001>
module attributes {stable_mosaic.version = 11 : i64} {
  func.func @_triplet_kernel(%arg0: i32, %arg1: memref<16x128xf32, #tpu.memory_space<vmem>>, %arg2: memref<16x128xf32, #tpu.memory_space<vmem>>, %arg3: memref<16x128xf32, #tpu.memory_space<vmem>>, %arg4: memref<1x1xf32, #tpu.memory_space<smem>>) attributes {dimension_semantics = [#tpu.dimension_semantics<parallel>], iteration_bounds = array<i64: 1>, scalar_prefetch = 0 : i64, scratch_operands = 0 : i64, tpu.core_type = #tpu.core_type<tc>, window_params = [{transform_indices = @transform_0, window_bounds = array<i64: 16, 128>}, {transform_indices = @transform_1, window_bounds = array<i64: 16, 128>}, {transform_indices = @transform_2, window_bounds = array<i64: 16, 128>}, {transform_indices = @transform_3, window_bounds = array<i64: 1, 1>}]} {
    %c0 = arith.constant 0 : index
    %c0_0 = arith.constant 0 : index
    %0 = vector.load %arg1[%c0, %c0_0] : memref<16x128xf32, #tpu.memory_space<vmem>>, vector<16x128xf32>
    %c0_1 = arith.constant 0 : index
    %c0_2 = arith.constant 0 : index
    %1 = vector.load %arg2[%c0_1, %c0_2] : memref<16x128xf32, #tpu.memory_space<vmem>>, vector<16x128xf32>
    %c0_3 = arith.constant 0 : index
    %c0_4 = arith.constant 0 : index
    %2 = vector.load %arg3[%c0_3, %c0_4] : memref<16x128xf32, #tpu.memory_space<vmem>>, vector<16x128xf32>
    %3 = arith.subf %2, %1 : vector<16x128xf32>
    %cst = arith.constant 2.000000e+00 : f32
    %4 = vector.broadcast %cst : f32 to vector<16x128xf32>
    %5 = arith.mulf %4, %0 : vector<16x128xf32>
    %6 = arith.subf %5, %1 : vector<16x128xf32>
    %7 = arith.subf %6, %2 : vector<16x128xf32>
    %8 = arith.mulf %3, %7 : vector<16x128xf32>
    %cst_5 = arith.constant dense<0.000000e+00> : vector<16xf32>
    %9 = vector.multi_reduction <add>, %8, %cst_5 [1] : vector<16x128xf32> to vector<16xf32>
    %10 = vector.shape_cast %9 : vector<16xf32> to vector<16x1xf32>
    %cst_6 = arith.constant 2.000000e-01 : f32
    %11 = vector.broadcast %cst_6 : f32 to vector<16x1xf32>
    %12 = arith.addf %10, %11 : vector<16x1xf32>
    %cst_7 = arith.constant 0.000000e+00 : f32
    %13 = vector.broadcast %cst_7 : f32 to vector<16x1xf32>
    %14 = arith.maximumf %12, %13 : vector<16x1xf32>
    %c16_i32 = arith.constant 16 : i32
    %15 = arith.muli %arg0, %c16_i32 : i32
    %16 = tpu.iota {dimensions = array<i32: 0>} : vector<16x1xi32>
    %17 = vector.broadcast %15 : i32 to vector<16x1xi32>
    %18 = arith.addi %17, %16 : vector<16x1xi32>
    %c16_i32_8 = arith.constant 16 : i32
    %19 = vector.broadcast %c16_i32_8 : i32 to vector<16x1xi32>
    %20 = arith.cmpi slt, %18, %19 : vector<16x1xi32>
    %cst_9 = arith.constant 0.000000e+00 : f32
    %21 = vector.broadcast %cst_9 : f32 to vector<16x1xf32>
    %22 = arith.select %20, %14, %21 : vector<16x1xi1>, vector<16x1xf32>
    %23 = vector.shape_cast %22 : vector<16x1xf32> to vector<1x16x1xf32>
    %cst_10 = arith.constant dense<0.000000e+00> : vector<1xf32>
    %24 = vector.multi_reduction <add>, %23, %cst_10 [1, 2] : vector<1x16x1xf32> to vector<1xf32>
    %25 = vector.shape_cast %24 : vector<1xf32> to vector<1x1x1xf32>
    %26 = vector.extract %25[0, 0, 0] : f32 from vector<1x1x1xf32>
    %c0_11 = arith.constant 0 : index
    %c0_12 = arith.constant 0 : index
    %27 = memref.load %arg4[%c0_11, %c0_12] : memref<1x1xf32, #tpu.memory_space<smem>>
    memref.store %26, %arg4[%c0_11, %c0_12] : memref<1x1xf32, #tpu.memory_space<smem>>
    return
  }
  func.func @transform_0(%arg0: i32) -> (i32, i32) {
    %c0_i32 = arith.constant 0 : i32
    %c0_i32_0 = arith.constant 0 : i32
    return %arg0, %c0_i32 : i32, i32
  }
  func.func @transform_1(%arg0: i32) -> (i32, i32) {
    %c0_i32 = arith.constant 0 : i32
    %c0_i32_0 = arith.constant 0 : i32
    return %arg0, %c0_i32 : i32, i32
  }
  func.func @transform_2(%arg0: i32) -> (i32, i32) {
    %c0_i32 = arith.constant 0 : i32
    %c0_i32_0 = arith.constant 0 : i32
    return %arg0, %c0_i32 : i32, i32
  }
  func.func @transform_3(%arg0: i32) -> (i32, i32) {
    %c0_i32 = arith.constant 0 : i32
    %c0_i32_0 = arith.constant 0 : i32
    return %arg0, %c0_i32 : i32, i32
  }
}

</mosaic_0001>

<bundles_post_ra>
// kernel: tpu_custom_call.1
= control target key start
LH: loop header
LB: loop body
LE: loop exit
PB: predicated region body
PF: predicated region fallthrough
CT: control target
= control target key end

     0   :  { %8 = vsyncpa [#allocation3], 0  ;;  %s241_s0 = inlined_call_operand.hbm [shape: f32[16,128], index: 0, kind: input, shape index: {}]   ;;  %s242_s1 = inlined_call_operand.hbm [shape: f32[16,128], index: 1, kind: input, shape index: {}]   ;;  %s243_s2 = inlined_call_operand.hbm [shape: f32[16,128], index: 2, kind: input, shape index: {}]   ;;  %s244_s3 = inlined_call_operand.hbm [shape: f32[1,1], index: 3, kind: output, shape index: {}]  }
   0x1   :  { %9 = vsyncpa [#allocation6], 0 }
   0x2   :  { %10 = vsyncpa [#allocation4], 0  ;;  %s203_s12 = smov [#allocation5]   ;;  %s204_s14 = smov [#allocation2]  }
   0x3   :  { %s28_s13 = sshll.u32 %s203_s12, 4  ;;  %s16_s15 = sshll.u32 %s204_s14, 4  ;;  %s29_s13 = int_to_ptr.vmem [resolvable:$true] %s28_s13  ;;  %s17_s15 = int_to_ptr.vmem [resolvable:$true] %s16_s15 }
   0x4   :  { %s137_s16 = scalar_lea.vmem %s29_s13, 256  ;;  %p142_p1 = scmp.lt.s32.totalorder %s29_s13, %s29_s13 }
   0x5   :  { %p138_p0 = scmp.ne.s32.totalorder %s29_s13, %s137_s16  ;;  %p143_p2 = scmp.lt.s32.totalorder %s137_s16, %s137_s16 }
   0x7   :  { %p144_p3 = por %p143_p2, %p142_p1 }
   0x9   :  { %p145_p4 = pnand %p144_p3, %p138_p0 }
   0xb   :  { %148 = shalt.err (!%p145_p4)
}
   0xc   :  { %s205_s17 = smov 128   ;;  %s206_s18 = smov 8  }
   0xd   :  { %34 = dma.hbm_to_vmem [thread:$0]  %s242_s1, 256, %s29_s13, [#allocation6], %s205_s17, %s205_s17, %s206_s18  }
   0xe   :  { %s157_s21 = scalar_lea.vmem %s17_s15, 256  ;;  %p162_p6 = scmp.lt.s32.totalorder %s17_s15, %s17_s15 }
   0xf   :  { %p158_p5 = scmp.ne.s32.totalorder %s17_s15, %s157_s21  ;;  %p163_p7 = scmp.lt.s32.totalorder %s157_s21, %s157_s21 }
  0x11   :  { %p164_p8 = por %p163_p7, %p162_p6 }
  0x13   :  { %p165_p9 = pnand %p164_p8, %p158_p5 }
  0x15   :  { %168 = shalt.err (!%p165_p9)
}
  0x16   :  { %22 = dma.hbm_to_vmem [thread:$0]  %s241_s0, 256, %s17_s15, [#allocation3], %s205_s17, %s205_s17, %s206_s18  }
  0x17   :  { %s207_s24 = smov [#allocation7]  }
  0x18   :  { %s40_s25 = sshll.u32 %s207_s24, 4  ;;  %s41_s25 = int_to_ptr.vmem [resolvable:$true] %s40_s25 }
  0x19   :  { %s177_s26 = scalar_lea.vmem %s41_s25, 256  ;;  %p182_p11 = scmp.lt.s32.totalorder %s41_s25, %s41_s25 }
  0x1a   :  { %p178_p10 = scmp.ne.s32.totalorder %s41_s25, %s177_s26  ;;  %p183_p12 = scmp.lt.s32.totalorder %s177_s26, %s177_s26 }
  0x1c   :  { %p184_p13 = por %p183_p12, %p182_p11 }
  0x1e   :  { %p185_p0 = pnand %p184_p13, %p178_p10 }
  0x20   :  { %188 = shalt.err (!%p185_p0)
}
  0x21   :  { %46 = dma.hbm_to_vmem [thread:$0]  %s243_s2, 256, %s41_s25, [#allocation6], %s205_s17, %s205_s17, %s206_s18  }
  0x22   :  { %197 = dma.done.wait [#allocation3], 256  }
  0x23   :  { %198 = vsyncadd [#allocation3], 4294967040 }
  0x24   :  { %199 = dma.done.wait [#allocation6], 512  }
  0x25   :  { %200 = vsyncadd [#allocation6], 4294966784  ;;  %v56_v0 = vld [vmem:[#allocation2] sm:$0xff]  ;;  %v58_v1 = vld [vmem:[#allocation5] sm:$0xff]  ;;  %vm91_vm0 = vcmask 7168   ;;  %s208_s2 = smov [#allocation8]  }
  0x26   :  { %v60_v2 = vld [vmem:[#allocation7] sm:$0xff]  ;;  %v64_v3 = vmul.f32 2.0, %v56_v0  ;;  %v57_v4 = vld [vmem:[#allocation2 + $0x8] sm:$0xff]  ;;  %v59_v5 = vld [vmem:[#allocation5 + $0x8] sm:$0xff] }
  0x27   :  { %v61_v6 = vld [vmem:[#allocation7 + $0x8] sm:$0xff]  ;;  %v65_v7 = vmul.f32 2.0, %v57_v4  ;;  %v62_v8 = vsub.f32 %v60_v2, %v58_v1 }
  0x28   :  { %v66_v9 = vsub.f32 %v64_v3, %v58_v1  ;;  %v63_v12 = vsub.f32 %v61_v6, %v59_v5 }
  0x29   :  { %v67_v10 = vsub.f32 %v65_v7, %v59_v5 }
  0x2a   :  { %v68_v11 = vsub.f32 %v66_v9, %v60_v2 }
  0x2b   :  { %v69_v13 = vsub.f32 %v67_v10, %v61_v6 }
  0x2c   :  { %v70_v14 = vmul.f32 %v68_v11, %v62_v8 }
  0x2d   :  { %v71_v15 = vmul.f32 %v69_v13, %v63_v12 }
  0x2e   :  { %72 = vadd.xlane.f32.xlu0 %v70_v14 }
  0x32   :  { %74 = vadd.xlane.f32.xlu0 %v71_v15 }
  0xb7   :  { %v73_v16 = vpop.xlane.xlu0 %72 }
  0xb8   :  { %v76_v17 = vadd.f32 0.2, %v73_v16 }
  0xba   :  { %v78_v19 = vmax.f32 %v76_v17, 0.0 }
  0xbb   :  { %v75_v18 = vpop.xlane.xlu0 %74 }
  0xbc   :  { %v77_v20 = vadd.f32 0.2, %v75_v18  ;;  %v92_v22 = vsel %vm91_vm0, %v78_v19, 0.0 }
  0xbe   :  { %v79_v21 = vmax.f32 %v77_v20, 0.0 }
  0xc0   :  { %v93_v23 = vsel %vm91_vm0, %v79_v21, 0.0 }
  0xc1   :  { %v94_v24 = vadd.f32 %v93_v23, %v92_v22 }
  0xc3   :  { %95 = vadd.xlane.f32.xlu1 %v94_v24 }
 0x14c   :  { %v96_v25 = vpop.xlane.xlu1 %95 }
 0x14d   :  { %v97_v26 = vrot.slane %v96_v25, 4 }
 0x14f   :  { %v98_v27 = vadd.f32 %v97_v26, %v96_v25 }
 0x151   :  { %v99_v28 = vrot.slane %v98_v27, 2 }
 0x153   :  { %v100_v29 = vadd.f32 %v99_v28, %v98_v27 }
 0x155   :  { %v101_v30 = vrot.slane %v100_v29, 1 }
 0x157   :  { %v102_v31 = vadd.f32 %v101_v30, %v100_v29 }
 0x159   :  { %121 = vpush %v102_v31 }
 0x18a   :  { %s122_s0 = spop %121 }
 0x18b   :  { %105 = sst [smem:[#allocation8]] %s122_s0 }
 0x18c   :  { %113 = dma.smem_to_hbm %s208_s2, 16, %s244_s3, [#allocation4]  }
 0x18d   :  { %201 = dma.done.wait [#allocation4], 16  }
 0x18e   :  { %202 = vsyncadd [#allocation4], 4294967280 }
 0x18f   :  { %117 = sfence }
 0x190   :  { %118 = vsyncpa [#allocation3], 1 }
 0x191   :  { %119 = vsyncpa [#allocation6], 1 }
 0x192   :  { %120 = vsyncpa [#allocation4], 1 }

</bundles_post_ra>
